<compile_context>
chip_gen: v6e
topology: v6e:2x2x1
jax: 0.10.0
libtpu: 0.0.40
codegen_flags: <defaults>
</compile_context>

<pallas_src>
import jax
import jax.numpy as jnp
from jax.experimental import pallas as pl
from jax.experimental.pallas import tpu as pltpu


def _round_up(n, m):
    return ((n + m - 1) // m) * m


def _cdiv(a, b):
    return (a + b - 1) // b


def xor_kernel(p_ref, x_ref, o_ref):
    # p_ref: SMEM f32[16] packed as
    #   [w1[0,0], w1[0,1], w1[0,2], w1[1,0], w1[1,1], w1[1,2],
    #    b1[0],   b1[1],   b1[2],   w2[0],   w2[1],   w2[2],   b2, pad, pad, pad]
    # x_ref: VMEM f32[2, Rt, 128]   (feature planes; batch on sublanes+lanes)
    # o_ref: VMEM f32[Rt, 128]
    x0 = x_ref[0]  # (Rt, 128), fully dense vregs
    x1 = x_ref[1]  # (Rt, 128)

    def sigmoid(z):
        # Exactly sigmoid(z) with a single EUP push (tanh) per activation.
        return 0.5 * jnp.tanh(0.5 * z) + 0.5

    # fc1 (2 -> 3), unrolled over the 3 hidden units as VPU broadcast-FMAs.
    h0 = sigmoid(x0 * p_ref[0] + x1 * p_ref[3] + p_ref[6])
    h1 = sigmoid(x0 * p_ref[1] + x1 * p_ref[4] + p_ref[7])
    h2 = sigmoid(x0 * p_ref[2] + x1 * p_ref[5] + p_ref[8])

    # fc2 (3 -> 1).
    o_ref[...] = sigmoid(h0 * p_ref[9] + h1 * p_ref[10] + h2 * p_ref[11] + p_ref[12])


def xor_forward(x, w1, b1, w2, b2, *, max_sublane_tile=2048):
    """x: (B, 2) f32; w1: (2, 3); b1: (1, 3); w2: (3, 1); b2: (1, 1) -> (B, 1).

    max_sublane_tile=2048 -> 1 MiB per feature plane per grid step
    (2048 x 128 x 4 B); ~6 MiB double-buffered total, safe on v5e/v6e/v7x.
    """
    B = x.shape[0]

    # Pack the 13 parameters into one 16-float SMEM buffer (single DMA).
    params = jnp.concatenate(
        [
            w1.reshape(-1),                 # 6
            b1.reshape(-1),                 # 3
            w2.reshape(-1),                 # 3
            b2.reshape(-1),                 # 1
            jnp.zeros((3,), jnp.float32),   # pad to 16
        ]
    ).astype(jnp.float32)

    # Batch onto (sublane, lane): rows of 128 lanes, Rt sublane-rows per tile.
    r_raw = max(_cdiv(B, 128), 1)
    if r_raw <= max_sublane_tile:
        rt = _round_up(r_raw, 8)      # single tile, minimum (8, 128)
        r_pad = rt
    else:
        rt = max_sublane_tile         # multiple of 8
        r_pad = _round_up(r_raw, rt)
    Bp = r_pad * 128

    # Layout pass: (B, 2) -> zero-pad batch -> (2, r_pad, 128) feature planes.
    # TODO(synk): for large production batches, supply x already in this plane
    # layout (or let XLA fuse the transpose into the producing op) so this
    # extra O(B) HBM pass disappears; kept here for the self-contained demo.
    x_planes = (
        jnp.pad(x.astype(jnp.float32), ((0, Bp - B), (0, 0)))
        .T.reshape(2, r_pad, 128)
    )

    out = pl.pallas_call(
        xor_kernel,
        out_shape=jax.ShapeDtypeStruct((r_pad, 128), jnp.float32),
        grid=(r_pad // rt,),
        in_specs=[
            pl.BlockSpec(memory_space=pltpu.MemorySpace.SMEM),   # packed params
            pl.BlockSpec((2, rt, 128), lambda i: (0, i, 0)),     # x planes
        ],
        out_specs=pl.BlockSpec((rt, 128), lambda i: (i, 0)),
        compiler_params=pltpu.CompilerParams(
            dimension_semantics=("parallel",),
        ),
    )(params, x_planes)

    # (r_pad, 128) row-major == padded batch order; drop padding.
    return out.reshape(Bp, 1)[:B, :]


def reference_forward(x, w1, b1, w2, b2):
    h = jax.nn.sigmoid(x @ w1 + b1)
    return jax.nn.sigmoid(h @ w2 + b2)


if __name__ == "__main__":
    key = jax.random.PRNGKey(0)
    k_x, k_w1, k_b1, k_w2, k_b2 = jax.random.split(key, 5)

    B = 8  # small batch; XOR classically uses the 4 boolean combos
    x = jax.random.normal(k_x, (B, 2), dtype=jnp.float32)

    # Parameter shapes match nn.Linear(2,3) / nn.Linear(3,1), stored as
    # (in, out) so the model computes x @ W + b.
    w1 = jax.random.uniform(k_w1, (2, 3), minval=-0.5, maxval=0.5, dtype=jnp.float32)
    b1 = jax.random.uniform(k_b1, (1, 3), minval=-0.5, maxval=0.5, dtype=jnp.float32)
    w2 = jax.random.uniform(k_w2, (3, 1), minval=-0.5, maxval=0.5, dtype=jnp.float32)
    b2 = jax.random.uniform(k_b2, (1, 1), minval=-0.5, maxval=0.5, dtype=jnp.float32)

    out = xor_forward(x, w1, b1, w2, b2)
    out = jax.block_until_ready(out)

    ref = reference_forward(x, w1, b1, w2, b2)
    assert out.shape == (B, 1), out.shape
    assert jnp.allclose(out, ref, atol=1e-5, rtol=1e-5), (out, ref)

    print("KERNEL_OK")
</pallas_src>

<mosaic_0001>
module attributes {stable_mosaic.version = 11 : i64} {
  func.func @xor_kernel(%arg0: i32, %arg1: memref<16xf32, #tpu.memory_space<smem>>, %arg2: memref<2x8x128xf32, #tpu.memory_space<vmem>>, %arg3: memref<8x128xf32, #tpu.memory_space<vmem>>) attributes {dimension_semantics = [#tpu.dimension_semantics<parallel>], iteration_bounds = array<i64: 1>, scalar_prefetch = 0 : i64, scratch_operands = 0 : i64, tpu.core_type = #tpu.core_type<tc>, window_params = [{transform_indices = @transform_0, window_bounds = array<i64: 16>}, {transform_indices = @transform_1, window_bounds = array<i64: 2, 8, 128>}, {transform_indices = @transform_2, window_bounds = array<i64: 8, 128>}]} {
    %c0 = arith.constant 0 : index
    %c0_0 = arith.constant 0 : index
    %c0_1 = arith.constant 0 : index
    %0 = vector.load %arg2[%c0, %c0_0, %c0_1] : memref<2x8x128xf32, #tpu.memory_space<vmem>>, vector<1x8x128xf32>
    %1 = vector.shape_cast %0 : vector<1x8x128xf32> to vector<8x128xf32>
    %c1 = arith.constant 1 : index
    %c0_2 = arith.constant 0 : index
    %c0_3 = arith.constant 0 : index
    %2 = vector.load %arg2[%c1, %c0_2, %c0_3] : memref<2x8x128xf32, #tpu.memory_space<vmem>>, vector<1x8x128xf32>
    %3 = vector.shape_cast %2 : vector<1x8x128xf32> to vector<8x128xf32>
    %c0_4 = arith.constant 0 : index
    %4 = memref.load %arg1[%c0_4] : memref<16xf32, #tpu.memory_space<smem>>
    %5 = vector.broadcast %4 : f32 to vector<8x128xf32>
    %6 = arith.mulf %1, %5 : vector<8x128xf32>
    %c3 = arith.constant 3 : index
    %7 = memref.load %arg1[%c3] : memref<16xf32, #tpu.memory_space<smem>>
    %8 = vector.broadcast %7 : f32 to vector<8x128xf32>
    %9 = arith.mulf %3, %8 : vector<8x128xf32>
    %10 = arith.addf %6, %9 : vector<8x128xf32>
    %c6 = arith.constant 6 : index
    %11 = memref.load %arg1[%c6] : memref<16xf32, #tpu.memory_space<smem>>
    %12 = vector.broadcast %11 : f32 to vector<8x128xf32>
    %13 = arith.addf %10, %12 : vector<8x128xf32>
    %cst = arith.constant 5.000000e-01 : f32
    %14 = vector.broadcast %cst : f32 to vector<8x128xf32>
    %15 = arith.mulf %14, %13 : vector<8x128xf32>
    %16 = math.tanh %15 : vector<8x128xf32>
    %cst_5 = arith.constant 5.000000e-01 : f32
    %17 = vector.broadcast %cst_5 : f32 to vector<8x128xf32>
    %18 = arith.mulf %17, %16 : vector<8x128xf32>
    %cst_6 = arith.constant 5.000000e-01 : f32
    %19 = vector.broadcast %cst_6 : f32 to vector<8x128xf32>
    %20 = arith.addf %18, %19 : vector<8x128xf32>
    %c1_7 = arith.constant 1 : index
    %21 = memref.load %arg1[%c1_7] : memref<16xf32, #tpu.memory_space<smem>>
    %22 = vector.broadcast %21 : f32 to vector<8x128xf32>
    %23 = arith.mulf %1, %22 : vector<8x128xf32>
    %c4 = arith.constant 4 : index
    %24 = memref.load %arg1[%c4] : memref<16xf32, #tpu.memory_space<smem>>
    %25 = vector.broadcast %24 : f32 to vector<8x128xf32>
    %26 = arith.mulf %3, %25 : vector<8x128xf32>
    %27 = arith.addf %23, %26 : vector<8x128xf32>
    %c7 = arith.constant 7 : index
    %28 = memref.load %arg1[%c7] : memref<16xf32, #tpu.memory_space<smem>>
    %29 = vector.broadcast %28 : f32 to vector<8x128xf32>
    %30 = arith.addf %27, %29 : vector<8x128xf32>
    %cst_8 = arith.constant 5.000000e-01 : f32
    %31 = vector.broadcast %cst_8 : f32 to vector<8x128xf32>
    %32 = arith.mulf %31, %30 : vector<8x128xf32>
    %33 = math.tanh %32 : vector<8x128xf32>
    %cst_9 = arith.constant 5.000000e-01 : f32
    %34 = vector.broadcast %cst_9 : f32 to vector<8x128xf32>
    %35 = arith.mulf %34, %33 : vector<8x128xf32>
    %cst_10 = arith.constant 5.000000e-01 : f32
    %36 = vector.broadcast %cst_10 : f32 to vector<8x128xf32>
    %37 = arith.addf %35, %36 : vector<8x128xf32>
    %c2 = arith.constant 2 : index
    %38 = memref.load %arg1[%c2] : memref<16xf32, #tpu.memory_space<smem>>
    %39 = vector.broadcast %38 : f32 to vector<8x128xf32>
    %40 = arith.mulf %1, %39 : vector<8x128xf32>
    %c5 = arith.constant 5 : index
    %41 = memref.load %arg1[%c5] : memref<16xf32, #tpu.memory_space<smem>>
    %42 = vector.broadcast %41 : f32 to vector<8x128xf32>
    %43 = arith.mulf %3, %42 : vector<8x128xf32>
    %44 = arith.addf %40, %43 : vector<8x128xf32>
    %c8 = arith.constant 8 : index
    %45 = memref.load %arg1[%c8] : memref<16xf32, #tpu.memory_space<smem>>
    %46 = vector.broadcast %45 : f32 to vector<8x128xf32>
    %47 = arith.addf %44, %46 : vector<8x128xf32>
    %cst_11 = arith.constant 5.000000e-01 : f32
    %48 = vector.broadcast %cst_11 : f32 to vector<8x128xf32>
    %49 = arith.mulf %48, %47 : vector<8x128xf32>
    %50 = math.tanh %49 : vector<8x128xf32>
    %cst_12 = arith.constant 5.000000e-01 : f32
    %51 = vector.broadcast %cst_12 : f32 to vector<8x128xf32>
    %52 = arith.mulf %51, %50 : vector<8x128xf32>
    %cst_13 = arith.constant 5.000000e-01 : f32
    %53 = vector.broadcast %cst_13 : f32 to vector<8x128xf32>
    %54 = arith.addf %52, %53 : vector<8x128xf32>
    %c9 = arith.constant 9 : index
    %55 = memref.load %arg1[%c9] : memref<16xf32, #tpu.memory_space<smem>>
    %56 = vector.broadcast %55 : f32 to vector<8x128xf32>
    %57 = arith.mulf %20, %56 : vector<8x128xf32>
    %c10 = arith.constant 10 : index
    %58 = memref.load %arg1[%c10] : memref<16xf32, #tpu.memory_space<smem>>
    %59 = vector.broadcast %58 : f32 to vector<8x128xf32>
    %60 = arith.mulf %37, %59 : vector<8x128xf32>
    %61 = arith.addf %57, %60 : vector<8x128xf32>
    %c11 = arith.constant 11 : index
    %62 = memref.load %arg1[%c11] : memref<16xf32, #tpu.memory_space<smem>>
    %63 = vector.broadcast %62 : f32 to vector<8x128xf32>
    %64 = arith.mulf %54, %63 : vector<8x128xf32>
    %65 = arith.addf %61, %64 : vector<8x128xf32>
    %c12 = arith.constant 12 : index
    %66 = memref.load %arg1[%c12] : memref<16xf32, #tpu.memory_space<smem>>
    %67 = vector.broadcast %66 : f32 to vector<8x128xf32>
    %68 = arith.addf %65, %67 : vector<8x128xf32>
    %cst_14 = arith.constant 5.000000e-01 : f32
    %69 = vector.broadcast %cst_14 : f32 to vector<8x128xf32>
    %70 = arith.mulf %69, %68 : vector<8x128xf32>
    %71 = math.tanh %70 : vector<8x128xf32>
    %cst_15 = arith.constant 5.000000e-01 : f32
    %72 = vector.broadcast %cst_15 : f32 to vector<8x128xf32>
    %73 = arith.mulf %72, %71 : vector<8x128xf32>
    %cst_16 = arith.constant 5.000000e-01 : f32
    %74 = vector.broadcast %cst_16 : f32 to vector<8x128xf32>
    %75 = arith.addf %73, %74 : vector<8x128xf32>
    %c0_17 = arith.constant 0 : index
    %c0_18 = arith.constant 0 : index
    %76 = vector.load %arg3[%c0_17, %c0_18] : memref<8x128xf32, #tpu.memory_space<vmem>>, vector<8x128xf32>
    tpu.vector_store %arg3[%c0_17, %c0_18], %75 {strides = array<i32>} : memref<8x128xf32, #tpu.memory_space<vmem>>, vector<8x128xf32>,
    return
  }
  func.func @transform_0(%arg0: i32) -> i32 {
    %c0_i32 = arith.constant 0 : i32
    %c0_i32_0 = arith.constant 0 : i32
    return %c0_i32 : i32
  }
  func.func @transform_1(%arg0: i32) -> (i32, i32, i32) {
    %c0_i32 = arith.constant 0 : i32
    %c0_i32_0 = arith.constant 0 : i32
    %c0_i32_1 = arith.constant 0 : i32
    return %c0_i32, %arg0, %c0_i32_0 : i32, i32, i32
  }
  func.func @transform_2(%arg0: i32) -> (i32, i32) {
    %c0_i32 = arith.constant 0 : i32
    %c0_i32_0 = arith.constant 0 : i32
    return %arg0, %c0_i32 : i32, i32
  }
}

</mosaic_0001>

<bundles_post_ra>
// kernel: tpu_custom_call.1
= control target key start
LH: loop header
LB: loop body
LE: loop exit
PB: predicated region body
PF: predicated region fallthrough
CT: control target
= control target key end

     0   :  { %7 = vsyncpa [#allocation5], 0  ;;  %s225_s0 = inlined_call_operand.hbm [shape: f32[16], index: 0, kind: input, shape index: {}]   ;;  %s226_s1 = inlined_call_operand.hbm [shape: f32[2,8,128], index: 1, kind: input, shape index: {}]   ;;  %s227_s2 = inlined_call_operand.hbm [shape: f32[8,128], index: 2, kind: output, shape index: {}]  }
   0x1   :  { %8 = vsyncpa [#allocation3], 0 }
   0x2   :  { %9 = vsyncpa [#allocation4], 0  ;;  %s196_s9 = smov [#allocation2]   ;;  %s197_s12 = smov [#allocation6]  }
   0x3   :  { %17 = dma.hbm_to_smem %s225_s0, 16, %s196_s9, [#allocation5]  }
   0x4   :  { %s23_s13 = sshll.u32 %s197_s12, 4  ;;  %s24_s13 = int_to_ptr.vmem [resolvable:$true] %s23_s13 }
   0x5   :  { %s158_s14 = scalar_lea.vmem %s24_s13, 256  ;;  %p163_p1 = scmp.lt.s32.totalorder %s24_s13, %s24_s13 }
   0x6   :  { %p159_p0 = scmp.ne.s32.totalorder %s24_s13, %s158_s14  ;;  %p164_p2 = scmp.lt.s32.totalorder %s158_s14, %s158_s14 }
   0x8   :  { %p165_p3 = por %p164_p2, %p163_p1 }
   0xa   :  { %p166_p4 = pnand %p165_p3, %p159_p0 }
   0xc   :  { %169 = shalt.err (!%p166_p4)
}
   0xd   :  { %s198_s15 = smov 128   ;;  %s199_s16 = smov 8  }
   0xe   :  { %29 = dma.hbm_to_vmem [thread:$0]  %s226_s1, 256, %s24_s13, [#allocation3], %s198_s15, %s198_s15, %s199_s16  }
   0xf   :  { %190 = dma.done.wait [#allocation5], 16  }
  0x10   :  { %191 = vsyncadd [#allocation5], 4294967280 }
  0x11   :  { %192 = dma.done.wait [#allocation3], 256  }
  0x12   :  { %193 = vsyncadd [#allocation3], 4294967040 }
  0x13   :  { %36 = sfence }
  0x14   :  { %s40_s0 = sld [smem:[#allocation2]]  ;;  %v37_v0 = vld [vmem:[#allocation6] sm:$0xff]  ;;  %v39_v1 = vld [vmem:[#allocation6 + $0x8] sm:$0xff]  ;;  %s200_s30 = smov [#allocation7]  }
  0x15   :  { %s117_s19 = sld [smem:[#allocation2 + $0x3]]  ;;  %s107_s3 = sshll.u32 %s200_s30, 4  ;;  %s108_s3 = int_to_ptr.vmem [resolvable:$true] %s107_s3 }
  0x16   :  { %s118_s20 = sld [smem:[#allocation2 + $0x6]]  ;;  %s170_s4 = scalar_lea.vmem %s108_s3, 128 }
  0x17   :  { %s119_s21 = sld [smem:[#allocation2 + $0x1]]  ;;  %p171_p5 = scmp.ne.s32.totalorder %s108_s3, %s170_s4 }
  0x18   :  { %s120_s22 = sld [smem:[#allocation2 + $0x4]]  ;;  %p175_p6 = scmp.lt.s32.totalorder %s108_s3, %s108_s3 }
  0x19   :  { %s121_s23 = sld [smem:[#allocation2 + $0x7]]  ;;  %p176_p7 = scmp.lt.s32.totalorder %s170_s4, %s170_s4 }
  0x1a   :  { %v41_v2 = vstv %s40_s0  ;;  %s122_s24 = sld [smem:[#allocation2 + $0x2]] }
  0x1b   :  { %v42_v3 = vmul.f32 %v41_v2, %v37_v0  ;;  %v44_v4 = vstv %s117_s19  ;;  %s123_s25 = sld [smem:[#allocation2 + $0x5]]  ;;  %p177_p8 = por %p176_p7, %p175_p6 }
  0x1c   :  { %v45_v5 = vmul.f32 %v44_v4, %v39_v1  ;;  %s124_s1 = sld [smem:[#allocation2 + $0x8]]  ;;  %v48_v6 = vstv %s118_s20 }
  0x1d   :  { %v55_v7 = vstv %s119_s21  ;;  %s125_s26 = sld [smem:[#allocation2 + $0x9]]  ;;  %p178_p9 = pnand %p177_p8, %p171_p5 }
  0x1e   :  { %v46_v8 = vadd.f32 %v45_v5, %v42_v3  ;;  %v56_v9 = vmul.f32 %v55_v7, %v37_v0  ;;  %v58_v10 = vstv %s120_s22  ;;  %s126_s27 = sld [smem:[#allocation2 + $0xa]] }
  0x1f   :  { %v59_v11 = vmul.f32 %v58_v10, %v39_v1  ;;  %v62_v13 = vstv %s121_s23  ;;  %s127_s28 = sld [smem:[#allocation2 + $0xb]] }
  0x20   :  { %v49_v12 = vadd.f32 %v48_v6, %v46_v8  ;;  %v69_v14 = vstv %s122_s24  ;;  %s128_s29 = sld [smem:[#allocation2 + $0xc]] }
  0x21   :  { %v60_v15 = vadd.f32 %v59_v11, %v56_v9  ;;  %v70_v16 = vmul.f32 %v69_v14, %v37_v0  ;;  %v72_v17 = vstv %s123_s25 }
  0x22   :  { %v50_v18 = vmul.f32 0.5, %v49_v12  ;;  %v73_v19 = vmul.f32 %v72_v17, %v39_v1  ;;  %v76_v21 = vstv %s124_s1 }
  0x23   :  { %v63_v20 = vadd.f32 %v62_v13, %v60_v15  ;;  %v83_v30 = vstv %s125_s26 }
  0x24   :  { %134 = vtanh.f32 %v50_v18  ;;  %v74_v22 = vadd.f32 %v73_v19, %v70_v16  ;;  %v86_v32 = vstv %s126_s27 }
  0x25   :  { %v64_v23 = vmul.f32 0.5, %v63_v20  ;;  %v90_v38 = vstv %s127_s28 }
  0x26   :  { %v77_v24 = vadd.f32 %v76_v21, %v74_v22  ;;  %v94_v42 = vstv %s128_s29 }
  0x27   :  { %136 = vtanh.f32 %v64_v23 }
  0x28   :  { %v78_v25 = vmul.f32 0.5, %v77_v24 }
  0x2a   :  { %138 = vtanh.f32 %v78_v25 }
  0x31   :  { %v135_v26 = vpop.eup %134 }
  0x32   :  { %v52_v27 = vmul.f32 0.5, %v135_v26 }
  0x34   :  { %v137_v28 = vpop.eup %136  ;;  %v53_v29 = vadd.f32 0.5, %v52_v27 }
  0x35   :  { %v66_v31 = vmul.f32 0.5, %v137_v28 }
  0x36   :  { %v84_v35 = vmul.f32 %v83_v30, %v53_v29 }
  0x37   :  { %v139_v33 = vpop.eup %138  ;;  %v67_v34 = vadd.f32 0.5, %v66_v31 }
  0x38   :  { %v80_v36 = vmul.f32 0.5, %v139_v33 }
  0x39   :  { %v87_v37 = vmul.f32 %v86_v32, %v67_v34 }
  0x3a   :  { %v81_v39 = vadd.f32 0.5, %v80_v36 }
  0x3b   :  { %v88_v40 = vadd.f32 %v87_v37, %v84_v35 }
  0x3c   :  { %v91_v41 = vmul.f32 %v90_v38, %v81_v39 }
  0x3e   :  { %v92_v43 = vadd.f32 %v91_v41, %v88_v40 }
  0x40   :  { %v95_v44 = vadd.f32 %v94_v42, %v92_v43 }
  0x42   :  { %v96_v45 = vmul.f32 0.5, %v95_v44 }
  0x44   :  { %140 = vtanh.f32 %v96_v45 }
  0x51   :  { %v141_v46 = vpop.eup %140 }
  0x52   :  { %v98_v47 = vmul.f32 0.5, %v141_v46 }
  0x54   :  { %v99_v48 = vadd.f32 0.5, %v98_v47 }
  0x56   :  { %100 = vst [vmem:[#allocation7] sm:$0xff] %v99_v48 }
  0x57   :  { %181 = shalt.err (!%p178_p9)
}
  0x58   :  { %110 = dma.vmem_to_hbm [thread:$0]  %s108_s3, 128, %s227_s2, [#allocation4]  }
  0x59   :  { %194 = dma.done.wait [#allocation4], 128  }
  0x5a   :  { %195 = vsyncadd [#allocation4], 4294967168 }
  0x5b   :  { %114 = vsyncpa [#allocation3], 1 }
  0x5c   :  { %115 = vsyncpa [#allocation4], 1 }
  0x5d   :  { %116 = vsyncpa [#allocation5], 1 }

</bundles_post_ra>
